<compile_context>
chip_gen: v5e
topology: v5e:2x2
jax: 0.10.0
libtpu: 0.0.40
codegen_flags: <defaults>
</compile_context>

<pallas_src>
import jax
import jax.numpy as jnp
from jax.experimental import pallas as pl
from jax.experimental.pallas import tpu as pltpu

_LANES = 128


def _make_loss_kernel(inv_mel, inv_pred):
    """Kernel with the true (unpadded) element counts baked in for the means."""

    def loss_kernel(mel_ref, mel_tgt_ref, pred_ref, tgt_ref,
                    mel_out_ref, pred_out_ref, acc_ref):
        i = pl.program_id(0)

        @pl.when(i == 0)
        def _init():
            acc_ref[...] = jnp.zeros_like(acc_ref)

        # Per-tile: pure VPU work (no cross-lane reduce).  Upcast inside the
        # kernel so bf16 can stay on the wire; padded elements are zero in
        # both operands so they contribute nothing.
        d = mel_ref[...].astype(jnp.float32) - mel_tgt_ref[...].astype(jnp.float32)
        acc_ref[...] += d * d

        @pl.when(i == pl.num_programs(0) - 1)
        def _finalize():
            # One XLU full-reduce for the mel accumulator.
            mel_out_ref[...] = jnp.sum(acc_ref[...], keepdims=True) * inv_mel
            # Packed predictor losses: row 0 = duration, 1 = energy, 2 = pitch.
            pd = pred_ref[...].astype(jnp.float32) - tgt_ref[...].astype(jnp.float32)
            pred_out_ref[...] = jnp.sum(pd * pd, axis=-1, keepdims=True) * inv_pred

    return loss_kernel


def _pad_to_rows(x_flat, rows_pad):
    pad = rows_pad * _LANES - x_flat.shape[0]
    return jnp.pad(x_flat, (0, pad)).reshape(rows_pad, _LANES)


def fastspeech_loss(mel, mel_target,
                    log_duration_predicted, duration_predictor_target,
                    energy_predicted, energy_predictor_target,
                    pitch_predicted, pitch_predictor_target,
                    *, tile_rows=512):
    # ---- mel stream: lane-dense (rows, 128), keep the wire dtype (f32/bf16) --
    n_mel = mel.size
    rows = -(-n_mel // _LANES)
    # Tile rows: multiple of 16 so the block tiling is legal for f32 and bf16.
    # 512 rows * 128 lanes * 4 B = 256 KiB per buffer; with 2 inputs x 2
    # double-buffers + scratch this stays far under the v7x 32 MiB scoped VMEM.
    tile_r = min(tile_rows, -(-rows // 16) * 16)
    num_tiles = -(-rows // tile_r)
    rows_pad = num_tiles * tile_r

    mel2 = _pad_to_rows(mel.reshape(-1), rows_pad)
    mel_tgt2 = _pad_to_rows(mel_target.reshape(-1), rows_pad)

    # ---- predictor streams: pack 3 pred rows + 3 target rows, lane-dense ----
    n_pred = log_duration_predicted.size
    t_pad = -(-n_pred // _LANES) * _LANES

    def _pack(*xs):
        return jnp.stack(
            [jnp.pad(x.reshape(-1).astype(jnp.float32), (0, t_pad - n_pred))
             for x in xs], axis=0)

    pred_pack = _pack(log_duration_predicted, energy_predicted, pitch_predicted)
    log_dur_tgt = jnp.log(duration_predictor_target.astype(jnp.float32) + 1.0)
    tgt_pack = _pack(log_dur_tgt, energy_predictor_target, pitch_predictor_target)

    kernel = _make_loss_kernel(1.0 / float(n_mel), 1.0 / float(n_pred))

    grid_spec = pltpu.PrefetchScalarGridSpec(
        num_scalar_prefetch=0,
        grid=(num_tiles,),
        in_specs=[
            pl.BlockSpec((tile_r, _LANES), lambda i: (i, 0)),   # mel
            pl.BlockSpec((tile_r, _LANES), lambda i: (i, 0)),   # mel target
            pl.BlockSpec((3, t_pad), lambda i: (0, 0)),         # packed preds
            pl.BlockSpec((3, t_pad), lambda i: (0, 0)),         # packed targets
        ],
        out_specs=(
            pl.BlockSpec((1, 1), lambda i: (0, 0)),             # mel loss
            pl.BlockSpec((3, 1), lambda i: (0, 0)),             # dur/energy/pitch
        ),
        scratch_shapes=[pltpu.VMEM((tile_r, _LANES), jnp.float32)],
    )

    mel_l, pred_l = pl.pallas_call(
        kernel,
        out_shape=(jax.ShapeDtypeStruct((1, 1), jnp.float32),
                   jax.ShapeDtypeStruct((3, 1), jnp.float32)),
        grid_spec=grid_spec,
        compiler_params=pltpu.CompilerParams(
            dimension_semantics=("arbitrary",)),   # resident accumulator axis
    )(mel2, mel_tgt2, pred_pack, tgt_pack)

    # TODO(synk): optional v7x 2-TC split — leading parallel axis with per-core
    # partial sums added in the wrapper; single-core version kept for clarity.
    return (mel_l[0, 0], pred_l[0, 0], pred_l[1, 0], pred_l[2, 0])


if __name__ == "__main__":
    key = jax.random.PRNGKey(0)
    ks = jax.random.split(key, 8)

    B, T_mel, N_MELS, T_SEQ = 2, 16, 32, 8

    mel = jax.random.normal(ks[0], (B, T_mel, N_MELS), jnp.float32)
    mel_target = jax.random.normal(ks[1], (B, T_mel, N_MELS), jnp.float32)

    log_duration_predicted = jax.random.normal(ks[2], (B, T_SEQ), jnp.float32)
    duration_predictor_target = jax.random.randint(ks[3], (B, T_SEQ), 0, 10, jnp.int32)

    energy_predicted = jax.random.normal(ks[4], (B, T_SEQ), jnp.float32)
    energy_predictor_target = jax.random.normal(ks[5], (B, T_SEQ), jnp.float32)

    pitch_predicted = jax.random.normal(ks[6], (B, T_SEQ), jnp.float32)
    pitch_predictor_target = jax.random.normal(ks[7], (B, T_SEQ), jnp.float32)

    losses = fastspeech_loss(mel, mel_target,
                             log_duration_predicted, duration_predictor_target,
                             energy_predicted, energy_predictor_target,
                             pitch_predicted, pitch_predictor_target)
    losses = jax.block_until_ready(losses)

    # Reference check (plain JAX) — same semantics as the PyTorch module.
    ref = (
        jnp.mean((mel - mel_target) ** 2),
        jnp.mean((log_duration_predicted
                  - jnp.log(duration_predictor_target.astype(jnp.float32) + 1.0)) ** 2),
        jnp.mean((energy_predicted - energy_predictor_target) ** 2),
        jnp.mean((pitch_predicted - pitch_predictor_target) ** 2),
    )
    for got, want in zip(losses, ref):
        assert jnp.allclose(got, want, rtol=1e-5, atol=1e-5), (got, want)

    print("KERNEL_OK")
</pallas_src>

<mosaic_0001>
module attributes {stable_mosaic.version = 11 : i64} {
  func.func @loss_kernel(%arg0: i32, %arg1: memref<16x128xf32, #tpu.memory_space<vmem>>, %arg2: memref<16x128xf32, #tpu.memory_space<vmem>>, %arg3: memref<3x128xf32, #tpu.memory_space<vmem>>, %arg4: memref<3x128xf32, #tpu.memory_space<vmem>>, %arg5: memref<1x1xf32, #tpu.memory_space<vmem>>, %arg6: memref<3x1xf32, #tpu.memory_space<vmem>>, %arg7: memref<16x128xf32, #tpu.memory_space<vmem>>) attributes {dimension_semantics = [#tpu.dimension_semantics<arbitrary>], iteration_bounds = array<i64: 1>, scalar_prefetch = 0 : i64, scratch_operands = 1 : i64, tpu.core_type = #tpu.core_type<tc>, window_params = [{transform_indices = @transform_0, window_bounds = array<i64: 16, 128>}, {transform_indices = @transform_1, window_bounds = array<i64: 16, 128>}, {pipeline_mode = #tpu.pipeline_mode<synchronous>, transform_indices = @transform_2, window_bounds = array<i64: 3, 128>}, {pipeline_mode = #tpu.pipeline_mode<synchronous>, transform_indices = @transform_3, window_bounds = array<i64: 3, 128>}, {pipeline_mode = #tpu.pipeline_mode<synchronous>, transform_indices = @transform_4, window_bounds = array<i64: 1, 1>}, {pipeline_mode = #tpu.pipeline_mode<synchronous>, transform_indices = @transform_5, window_bounds = array<i64: 3, 1>}]} {
    %c0_i32 = arith.constant 0 : i32
    %0 = arith.cmpi eq, %arg0, %c0_i32 : i32
    %1 = arith.extui %0 : i1 to i32
    %c0_i32_0 = arith.constant 0 : i32
    %2 = arith.cmpi ne, %1, %c0_i32_0 : i32
    scf.if %2 {
      %cst = arith.constant 0.000000e+00 : f32
      %13 = vector.broadcast %cst : f32 to vector<16x128xf32>
      %c0_10 = arith.constant 0 : index
      %c0_11 = arith.constant 0 : index
      %14 = vector.load %arg7[%c0_10, %c0_11] : memref<16x128xf32, #tpu.memory_space<vmem>>, vector<16x128xf32>
      tpu.vector_store %arg7[%c0_10, %c0_11], %13 {strides = array<i32>} : memref<16x128xf32, #tpu.memory_space<vmem>>, vector<16x128xf32>,
    } else {
    }
    %c0 = arith.constant 0 : index
    %c0_1 = arith.constant 0 : index
    %3 = vector.load %arg1[%c0, %c0_1] : memref<16x128xf32, #tpu.memory_space<vmem>>, vector<16x128xf32>
    %c0_2 = arith.constant 0 : index
    %c0_3 = arith.constant 0 : index
    %4 = vector.load %arg2[%c0_2, %c0_3] : memref<16x128xf32, #tpu.memory_space<vmem>>, vector<16x128xf32>
    %5 = arith.subf %3, %4 : vector<16x128xf32>
    %c0_4 = arith.constant 0 : index
    %c0_5 = arith.constant 0 : index
    %6 = vector.load %arg7[%c0_4, %c0_5] : memref<16x128xf32, #tpu.memory_space<vmem>>, vector<16x128xf32>
    %7 = arith.mulf %5, %5 : vector<16x128xf32>
    %8 = arith.addf %6, %7 : vector<16x128xf32>
    %c0_6 = arith.constant 0 : index
    %c0_7 = arith.constant 0 : index
    %9 = vector.load %arg7[%c0_6, %c0_7] : memref<16x128xf32, #tpu.memory_space<vmem>>, vector<16x128xf32>
    tpu.vector_store %arg7[%c0_6, %c0_7], %8 {strides = array<i32>} : memref<16x128xf32, #tpu.memory_space<vmem>>, vector<16x128xf32>,
    %c0_i32_8 = arith.constant 0 : i32
    %10 = arith.cmpi eq, %arg0, %c0_i32_8 : i32
    %11 = arith.extui %10 : i1 to i32
    %c0_i32_9 = arith.constant 0 : i32
    %12 = arith.cmpi ne, %11, %c0_i32_9 : i32
    scf.if %12 {
      %c0_10 = arith.constant 0 : index
      %c0_11 = arith.constant 0 : index
      %13 = vector.load %arg7[%c0_10, %c0_11] : memref<16x128xf32, #tpu.memory_space<vmem>>, vector<16x128xf32>
      %14 = vector.shape_cast %13 : vector<16x128xf32> to vector<1x16x128xf32>
      %cst = arith.constant dense<0.000000e+00> : vector<1xf32>
      %15 = vector.multi_reduction <add>, %14, %cst [1, 2] : vector<1x16x128xf32> to vector<1xf32>
      %16 = vector.shape_cast %15 : vector<1xf32> to vector<1x1x1xf32>
      %17 = vector.extract %16[0, 0, 0] : f32 from vector<1x1x1xf32>
      %18 = vector.broadcast %17 : f32 to vector<1x1xf32>
      %cst_12 = arith.constant 9.765625E-4 : f32
      %19 = vector.broadcast %cst_12 : f32 to vector<1x1xf32>
      %20 = arith.mulf %18, %19 : vector<1x1xf32>
      %c0_13 = arith.constant 0 : index
      %c0_14 = arith.constant 0 : index
      %21 = vector.load %arg5[%c0_13, %c0_14] : memref<1x1xf32, #tpu.memory_space<vmem>>, vector<1x1xf32>
      tpu.vector_store %arg5[%c0_13, %c0_14], %20 {strides = array<i32>} : memref<1x1xf32, #tpu.memory_space<vmem>>, vector<1x1xf32>,
      %c0_15 = arith.constant 0 : index
      %c0_16 = arith.constant 0 : index
      %22 = vector.load %arg3[%c0_15, %c0_16] : memref<3x128xf32, #tpu.memory_space<vmem>>, vector<3x128xf32>
      %c0_17 = arith.constant 0 : index
      %c0_18 = arith.constant 0 : index
      %23 = vector.load %arg4[%c0_17, %c0_18] : memref<3x128xf32, #tpu.memory_space<vmem>>, vector<3x128xf32>
      %24 = arith.subf %22, %23 : vector<3x128xf32>
      %25 = arith.mulf %24, %24 : vector<3x128xf32>
      %cst_19 = arith.constant dense<0.000000e+00> : vector<3xf32>
      %26 = vector.multi_reduction <add>, %25, %cst_19 [1] : vector<3x128xf32> to vector<3xf32>
      %27 = vector.shape_cast %26 : vector<3xf32> to vector<3x1xf32>
      %cst_20 = arith.constant 6.250000e-02 : f32
      %28 = vector.broadcast %cst_20 : f32 to vector<3x1xf32>
      %29 = arith.mulf %27, %28 : vector<3x1xf32>
      %c0_21 = arith.constant 0 : index
      %c0_22 = arith.constant 0 : index
      %30 = vector.load %arg6[%c0_21, %c0_22] : memref<3x1xf32, #tpu.memory_space<vmem>>, vector<3x1xf32>
      tpu.vector_store %arg6[%c0_21, %c0_22], %29 {strides = array<i32>} : memref<3x1xf32, #tpu.memory_space<vmem>>, vector<3x1xf32>,
    } else {
    }
    return
  }
  func.func @transform_0(%arg0: i32) -> (i32, i32) {
    %c0_i32 = arith.constant 0 : i32
    %c0_i32_0 = arith.constant 0 : i32
    return %arg0, %c0_i32 : i32, i32
  }
  func.func @transform_1(%arg0: i32) -> (i32, i32) {
    %c0_i32 = arith.constant 0 : i32
    %c0_i32_0 = arith.constant 0 : i32
    return %arg0, %c0_i32 : i32, i32
  }
  func.func @transform_2(%arg0: i32) -> (i32, i32) {
    %c0_i32 = arith.constant 0 : i32
    %c0_i32_0 = arith.constant 0 : i32
    %c0_i32_1 = arith.constant 0 : i32
    return %c0_i32, %c0_i32_0 : i32, i32
  }
  func.func @transform_3(%arg0: i32) -> (i32, i32) {
    %c0_i32 = arith.constant 0 : i32
    %c0_i32_0 = arith.constant 0 : i32
    %c0_i32_1 = arith.constant 0 : i32
    return %c0_i32, %c0_i32_0 : i32, i32
  }
  func.func @transform_4(%arg0: i32) -> (i32, i32) {
    %c0_i32 = arith.constant 0 : i32
    %c0_i32_0 = arith.constant 0 : i32
    %c0_i32_1 = arith.constant 0 : i32
    return %c0_i32, %c0_i32_0 : i32, i32
  }
  func.func @transform_5(%arg0: i32) -> (i32, i32) {
    %c0_i32 = arith.constant 0 : i32
    %c0_i32_0 = arith.constant 0 : i32
    %c0_i32_1 = arith.constant 0 : i32
    return %c0_i32, %c0_i32_0 : i32, i32
  }
}

</mosaic_0001>

<bundles_post_ra>
// kernel: tpu_custom_call.1
= control target key start
LH: loop header
LB: loop body
LE: loop exit
PB: predicated region body
PF: predicated region fallthrough
CT: control target
= control target key end

     0   :  { %11 = vsyncpa [#allocation4], 0  ;;  %s344_s0 = inlined_call_operand.hbm [shape: f32[16,128], index: 0, kind: input, shape index: {}]   ;;  %s345_s1 = inlined_call_operand.hbm [shape: f32[16,128], index: 1, kind: input, shape index: {}]   ;;  %s346_s2 = inlined_call_operand.hbm [shape: f32[3,128], index: 2, kind: input, shape index: {}]   ;;  %s347_s3 = inlined_call_operand.hbm [shape: f32[3,128], index: 3, kind: input, shape index: {}]   ;;  %s348_s4 = inlined_call_operand.hbm [shape: f32[1,1], index: 4, kind: output, shape index: {0}]   ;;  %s349_s5 = inlined_call_operand.vmem [shape: f32[3,1], index: 5, kind: output, shape index: {1}]  }
   0x1   :  { %12 = vsyncpa [#allocation7], 0 }
   0x2   :  { %13 = vsyncpa [#allocation10], 0 }
   0x3   :  { %14 = vsyncpa [#allocation5], 0  ;;  %s32_s20 = sshll.u32 %s345_s1, 4  ;;  %s289_s21 = smov [#allocation6]   ;;  %s33_s20 = int_to_ptr.hbm [resolvable:$true] %s32_s20 }
   0x4   :  { %s34_s22 = sshll.u32 %s289_s21, 4  ;;  %s19_s25 = sshll.u32 %s344_s0, 4  ;;  %s35_s22 = int_to_ptr.vmem [resolvable:$true] %s34_s22  ;;  %s20_s25 = int_to_ptr.hbm [resolvable:$true] %s19_s25 }
   0x5   :  { %s290_s26 = smov 128   ;;  %s291_s27 = smov 8  }
   0x6   :  { %40 = dma.hbm_to_vmem [thread:$0]  %s33_s20, 256, %s35_s22, [#allocation7], %s290_s26, %s290_s26, %s291_s27  }
   0x7   :  { %s292_s28 = smov [#allocation3]   ;;  %s46_s7 = sshll.u32 %s346_s2, 4  ;;  %s47_s7 = int_to_ptr.hbm [resolvable:$true] %s46_s7 }
   0x8   :  { %s21_s29 = sshll.u32 %s292_s28, 4  ;;  %s57_s9 = sshll.u32 %s347_s3, 4  ;;  %s22_s29 = int_to_ptr.vmem [resolvable:$true] %s21_s29  ;;  %s58_s9 = int_to_ptr.hbm [resolvable:$true] %s57_s9 }
   0x9   :  { %27 = dma.hbm_to_vmem [thread:$0]  %s20_s25, 256, %s22_s29, [#allocation4], %s290_s26, %s290_s26, %s291_s27  }
   0xa   :  { %s293_s10 = smov [#allocation8]   ;;  %s294_s0 = smov [#allocation9]  }
   0xb   :  { %s48_s11 = sshll.u32 %s293_s10, 4  ;;  %s59_s12 = sshll.u32 %s294_s0, 4  ;;  %s49_s11 = int_to_ptr.vmem [resolvable:$true] %s48_s11  ;;  %s60_s12 = int_to_ptr.vmem [resolvable:$true] %s59_s12 }
   0xc   :  { %51 = dma.hbm_to_vmem [thread:$0]  %s47_s7, 64, %s49_s11, [#allocation7]  }
   0xd   :  { %62 = dma.hbm_to_vmem [thread:$0]  %s58_s9, 64, %s60_s12, [#allocation10]  }
   0xe   :  { %281 = dma.done.wait [#allocation4], 256  }
   0xf   :  { %282 = vsyncadd [#allocation4], 4294967040 }
  0x10   :  { %283 = dma.done.wait [#allocation7], 320  }
  0x11   :  { %284 = vsyncadd [#allocation7], 4294966976 }
  0x12   :  { %285 = dma.done.wait [#allocation10], 64  }
  0x13   :  { %286 = vsyncadd [#allocation10], 4294967232  ;;  %v85_v0 = vld [vmem:[#allocation3] sm:$0xff]  ;;  %v86_v1 = vld [vmem:[#allocation3 + $0x8] sm:$0xff]  ;;  %vm122_vm0 = vcmask 1042432   ;;  %vm127_vm1 = vcmask 2048  }
  0x14   :  { %v87_v2 = vld [vmem:[#allocation6] sm:$0xff]  ;;  %v88_v3 = vld [vmem:[#allocation6 + $0x8] sm:$0xff]  ;;  %v118_v6 = vld [vmem:[#allocation8] sm:$0x7]  ;;  %s295_s13 = smov [#allocation11]   ;;  %s136_s17 = sshll.u32 %s348_s4, 4  ;;  %s137_s17 = int_to_ptr.hbm [resolvable:$true] %s136_s17 }
  0x15   :  { %v89_v4 = vsub.f32 %v85_v0, %v87_v2  ;;  %v90_v5 = vsub.f32 %v86_v1, %v88_v3  ;;  %v119_v7 = vld [vmem:[#allocation9] sm:$0x7]  ;;  %s134_s14 = sshll.u32 %s295_s13, 4  ;;  %vm116_vm2 = vcmask 0   ;;  %s135_s14 = int_to_ptr.vmem [resolvable:$true] %s134_s14 }
  0x16   :  { %v120_v10 = vsub.f32 %v118_v6, %v119_v7 }
  0x17   :  { %v93_v8 = vmul.f32 %v89_v4, %v89_v4  ;;  %v94_v9 = vmul.f32 %v90_v5, %v90_v5 }
  0x18   :  { %v121_v12 = vmul.f32 %v120_v10, %v120_v10 }
  0x19   :  { %v104_v11 = vadd.f32 %v94_v9, %v93_v8 }
  0x1a   :  { %v123_v13 = vsel %vm122_vm0, %v121_v12, 0.0 }
  0x1b   :  { %105 = vadd.xlane.f32.xlu0 %v104_v11 }
  0x23   :  { %124 = vadd.xlane.f32.xlu0 %v123_v13 }
  0x8e   :  { %v106_v14 = vpop.xlane.xlu0 %105 }
  0x8f   :  { %v107_v15 = vrot.slane %v106_v14, 4 }
  0x91   :  { %v108_v16 = vadd.f32 %v107_v15, %v106_v14 }
  0x93   :  { %v109_v17 = vrot.slane %v108_v16, 2 }
  0x95   :  { %v110_v18 = vadd.f32 %v109_v17, %v108_v16 }
  0x96   :  { %v125_v21 = vpop.xlane.xlu0 %124 }
  0x97   :  { %v111_v19 = vrot.slane %v110_v18, 1  ;;  %v126_v22 = vmul.f32 0.0625, %v125_v21 }
  0x99   :  { %v112_v20 = vadd.f32 %v111_v19, %v110_v18  ;;  %128 = vst.msk [vmem:[%s349_s5] sm:$0x7] %vm127_vm1, %v126_v22 }
  0x9b   :  { %152 = vpush %v112_v20 }
  0xcc   :  { %s153_s18 = spop %152 }
  0xcd   :  { %v114_v23 = vstv %s153_s18 }
  0xce   :  { %v115_v24 = vmul.f32 0.0009765625, %v114_v23 }
  0xd0   :  { %117 = vst.msk [vmem:[#allocation11] sm:$0x1] %vm116_vm2, %v115_v24 }
  0xd1   :  { %139 = dma.vmem_to_hbm [thread:$0]  %s135_s14, 16, %s137_s17, [#allocation5]  }
  0xd2   :  { %287 = dma.done.wait [#allocation5], 16  }
  0xd3   :  { %288 = vsyncadd [#allocation5], 4294967280 }
  0xd4   :  { %148 = vsyncpa [#allocation4], 1 }
  0xd5   :  { %149 = vsyncpa [#allocation7], 1 }
  0xd6   :  { %150 = vsyncpa [#allocation10], 1 }
  0xd7   :  { %151 = vsyncpa [#allocation5], 1 }

</bundles_post_ra>
